<compile_context>
chip_gen: v6e
topology: v6e:2x2x1
jax: 0.10.0
libtpu: 0.0.40
codegen_flags: <defaults>
</compile_context>

<pallas_src>
import jax
import jax.numpy as jnp
from jax.experimental import pallas as pl
from jax.experimental.pallas import tpu as pltpu


def _logreg_kernel(x_ref, w_ref, b_ref, o_ref):
    # x_ref: [tile_b, D] (input dtype), w_ref: [D, 1], b_ref: SMEM f32[1],
    # o_ref: [tile_b, 1].
    z = jnp.dot(x_ref[...], w_ref[...], preferred_element_type=jnp.float32)  # [tile_b, 1] f32
    z = z + b_ref[0]                                                         # scalar bias (SMEM)
    o_ref[...] = jax.nn.sigmoid(z).astype(o_ref.dtype)


def _pick_tile_b(B, D, itemsize, *, target_bytes=4 << 20, min_tb=512,
                 vmem_block_budget=24 << 20):
    """Pick a batch tile: ~target_bytes of x per block, multiple of 128, VMEM-safe."""
    if B <= min_tb:
        return int(B)  # single full-array block
    tb = (target_bytes // (D * itemsize)) // 128 * 128
    tb = max(min_tb, tb)
    # v7x: guarantee >= 2 grid tiles so both TensorCores get work.
    half = max(128, (B // 2) // 128 * 128)
    tb = min(tb, half)
    # Keep 2x (double-buffer) the x block inside scoped VMEM on every generation
    # (v7x has only 64 MiB/TC physical, 32 MiB scoped default).
    max_rows = vmem_block_budget // (2 * D * itemsize)
    if tb > max_rows:
        tb = max(8, (max_rows // 8) * 8)
        # TODO(synk): for extremely large D, tile D with a trailing "arbitrary"
        # reduction grid axis + f32 VMEM accumulator instead of shrinking tile_b.
    return int(tb)


def logistic_regression_forward(x, weight, bias):
    """x: [B, D]; weight: [1, D] (PyTorch nn.Linear layout); bias: [1]. -> [B, 1]."""
    B, D = x.shape
    out_dtype = x.dtype
    itemsize = jnp.dtype(x.dtype).itemsize

    # Tiny params: weight as a (D, 1) column in x's dtype (x itself is NOT upcast);
    # only cast when x is a float type we intend to compute in.
    w = weight.reshape(D, 1)
    if jnp.issubdtype(x.dtype, jnp.floating):
        w = w.astype(x.dtype)
    b = bias.reshape(1).astype(jnp.float32)

    tb = _pick_tile_b(B, D, itemsize)
    num_tiles = pl.cdiv(B, tb)

    cost = pl.CostEstimate(
        flops=2 * B * D,
        transcendentals=B,
        bytes_accessed=B * D * itemsize + D * itemsize
        + B * jnp.dtype(out_dtype).itemsize,
    )

    out = pl.pallas_call(
        _logreg_kernel,
        out_shape=jax.ShapeDtypeStruct((B, 1), out_dtype),
        grid=(num_tiles,),
        in_specs=[
            pl.BlockSpec((tb, D), lambda i: (i, 0)),             # streamed x batch tile
            pl.BlockSpec((D, 1), lambda i: (0, 0)),              # resident weight column
            pl.BlockSpec(memory_space=pltpu.MemorySpace.SMEM),   # bias scalar in SMEM
        ],
        out_specs=pl.BlockSpec((tb, 1), lambda i: (i, 0)),
        compiler_params=pltpu.CompilerParams(
            dimension_semantics=("parallel",),   # shard batch tiles across v7x's 2 TCs
            vmem_limit_bytes=32 * 1024 * 1024,
        ),
        cost_estimate=cost,
    )(x, w, b)

    return out


if __name__ == "__main__":
    key = jax.random.PRNGKey(0)
    kx, kw, kb, kx2 = jax.random.split(key, 4)

    # Small shapes consistent with the module: batch=8, input_dim=128.
    B, D = 8, 128
    x = jax.random.normal(kx, (B, D), dtype=jnp.float32)
    # Deterministic parameter init mimicking nn.Linear's uniform(-1/sqrt(D), 1/sqrt(D)).
    bound = 1.0 / jnp.sqrt(jnp.float32(D))
    weight = jax.random.uniform(kw, (1, D), minval=-bound, maxval=bound, dtype=jnp.float32)
    bias = jax.random.uniform(kb, (1,), minval=-bound, maxval=bound, dtype=jnp.float32)

    out = logistic_regression_forward(x, weight, bias)
    out = jax.block_until_ready(out)
    ref = jax.nn.sigmoid(x @ weight.T + bias)
    assert out.shape == (B, 1)
    assert jnp.allclose(out, ref, atol=1e-5, rtol=1e-5)

    # Exercise the multi-tile + ragged-last-block path (B not a multiple of tile_b).
    B2 = 1000
    x2 = jax.random.normal(kx2, (B2, D), dtype=jnp.float32)
    out2 = logistic_regression_forward(x2, weight, bias)
    out2 = jax.block_until_ready(out2)
    ref2 = jax.nn.sigmoid(x2 @ weight.T + bias)
    assert out2.shape == (B2, 1)
    assert jnp.allclose(out2, ref2, atol=1e-4, rtol=1e-4)

    print("KERNEL_OK")
</pallas_src>

<mosaic_0001>
module attributes {stable_mosaic.version = 11 : i64} {
  func.func @_logreg_kernel(%arg0: i32, %arg1: memref<8x128xf32, #tpu.memory_space<vmem>>, %arg2: memref<128x1xf32, #tpu.memory_space<vmem>>, %arg3: memref<1xf32, #tpu.memory_space<smem>>, %arg4: memref<8x1xf32, #tpu.memory_space<vmem>>) attributes {dimension_semantics = [#tpu.dimension_semantics<parallel>], iteration_bounds = array<i64: 1>, scalar_prefetch = 0 : i64, scratch_operands = 0 : i64, tpu.core_type = #tpu.core_type<tc>, window_params = [{transform_indices = @transform_0, window_bounds = array<i64: 8, 128>}, {pipeline_mode = #tpu.pipeline_mode<synchronous>, transform_indices = @transform_1, window_bounds = array<i64: 128, 1>}, {transform_indices = @transform_2, window_bounds = array<i64: 1>}, {transform_indices = @transform_3, window_bounds = array<i64: 8, 1>}]} {
    %c0 = arith.constant 0 : index
    %c0_0 = arith.constant 0 : index
    %0 = vector.load %arg1[%c0, %c0_0] : memref<8x128xf32, #tpu.memory_space<vmem>>, vector<8x128xf32>
    %c0_1 = arith.constant 0 : index
    %c0_2 = arith.constant 0 : index
    %1 = vector.load %arg2[%c0_1, %c0_2] : memref<128x1xf32, #tpu.memory_space<vmem>>, vector<128x1xf32>
    %cst = arith.constant dense<0.000000e+00> : vector<8x1xf32>
    %2 = tpu.matmul %0, %1, %cst {dimension_numbers = #tpu.dot_dimension_numbers<[1], [0], [0], [1], [0, 0, 1, 1], [], []>} : vector<8x128xf32>, vector<128x1xf32>, vector<8x1xf32> -> vector<8x1xf32>
    %c0_3 = arith.constant 0 : index
    %3 = memref.load %arg3[%c0_3] : memref<1xf32, #tpu.memory_space<smem>>
    %4 = vector.broadcast %3 : f32 to vector<8x1xf32>
    %5 = arith.addf %2, %4 : vector<8x1xf32>
    %6 = arith.negf %5 : vector<8x1xf32>
    %7 = math.exp %6 : vector<8x1xf32>
    %cst_4 = arith.constant 1.000000e+00 : f32
    %8 = vector.broadcast %cst_4 : f32 to vector<8x1xf32>
    %9 = arith.addf %8, %7 : vector<8x1xf32>
    %10 = arith.divf %8, %9 : vector<8x1xf32>
    %c0_5 = arith.constant 0 : index
    %c0_6 = arith.constant 0 : index
    %11 = vector.load %arg4[%c0_5, %c0_6] : memref<8x1xf32, #tpu.memory_space<vmem>>, vector<8x1xf32>
    tpu.vector_store %arg4[%c0_5, %c0_6], %10 {strides = array<i32>} : memref<8x1xf32, #tpu.memory_space<vmem>>, vector<8x1xf32>,
    return
  }
  func.func @transform_0(%arg0: i32) -> (i32, i32) {
    %c0_i32 = arith.constant 0 : i32
    %c0_i32_0 = arith.constant 0 : i32
    return %arg0, %c0_i32 : i32, i32
  }
  func.func @transform_1(%arg0: i32) -> (i32, i32) {
    %c0_i32 = arith.constant 0 : i32
    %c0_i32_0 = arith.constant 0 : i32
    %c0_i32_1 = arith.constant 0 : i32
    return %c0_i32, %c0_i32_0 : i32, i32
  }
  func.func @transform_2(%arg0: i32) -> i32 {
    %c0_i32 = arith.constant 0 : i32
    %c0_i32_0 = arith.constant 0 : i32
    return %c0_i32 : i32
  }
  func.func @transform_3(%arg0: i32) -> (i32, i32) {
    %c0_i32 = arith.constant 0 : i32
    %c0_i32_0 = arith.constant 0 : i32
    return %arg0, %c0_i32 : i32, i32
  }
}

</mosaic_0001>

<bundles_post_ra>
// kernel: tpu_custom_call.1
= control target key start
LH: loop header
LB: loop body
LE: loop exit
PB: predicated region body
PF: predicated region fallthrough
CT: control target
= control target key end

     0   :  { %v175_v0 = vmov 0.0   ;;  %vm176_vm0 = vmmov 0   ;;  %vm110_vm1 = vcmask 7168   ;;  %s254_s1 = inlined_call_operand.vmem [shape: f32[128,1], index: 1, kind: input, shape index: {}]   ;;  %s255_s0 = inlined_call_operand.vmem [shape: f32[8,128], index: 0, kind: input, shape index: {}]   ;;  %s256_s2 = inlined_call_operand.<no memory space> [shape: f32[1], index: 2, kind: input, shape index: {}]   ;;  %s257_s3 = inlined_call_operand.vmem [shape: f32[8,1], index: 3, kind: output, shape index: {}]  }
   0x1   :  { %134 = vmatprep.subr.mxu0 %v175_v0  ;;  %v31_v1 = vld [vmem:[%s254_s1 + $0x78] sm:$0xff]  ;;  %v30_v2 = vld [vmem:[%s254_s1 + $0x70] sm:$0xff]  ;;  %166 = vmatprep.mubr.msk.f32.mxu0 %vm176_vm0, %v175_v0  ;;  %v29_v3 = vld [vmem:[%s254_s1 + $0x68] sm:$0xff]  ;;  %v33_v18 = vstv %s256_s2 }
   0x2   :  { %135 = vmatpush3.msra.mxu0 %v31_v1  ;;  %v28_v4 = vld [vmem:[%s254_s1 + $0x60] sm:$0xff]  ;;  %v27_v5 = vld [vmem:[%s254_s1 + $0x58] sm:$0xff]  ;;  %v26_v6 = vld [vmem:[%s254_s1 + $0x50] sm:$0xff] }
   0x3   :  { %136 = vmatprep.subr.mxu0 %v175_v0  ;;  %v25_v7 = vld [vmem:[%s254_s1 + $0x48] sm:$0xff]  ;;  %v24_v8 = vld [vmem:[%s254_s1 + $0x40] sm:$0xff]  ;;  %v23_v9 = vld [vmem:[%s254_s1 + $0x38] sm:$0xff] }
   0x4   :  { %137 = vmatpush3.msra.mxu0 %v30_v2  ;;  %v22_v10 = vld [vmem:[%s254_s1 + $0x30] sm:$0xff]  ;;  %v21_v11 = vld [vmem:[%s254_s1 + $0x28] sm:$0xff]  ;;  %v20_v12 = vld [vmem:[%s254_s1 + $0x20] sm:$0xff] }
   0x5   :  { %138 = vmatprep.subr.mxu0 %v175_v0  ;;  %v19_v13 = vld [vmem:[%s254_s1 + $0x18] sm:$0xff]  ;;  %v18_v14 = vld [vmem:[%s254_s1 + $0x10] sm:$0xff]  ;;  %v17_v15 = vld [vmem:[%s254_s1 + $0x8] sm:$0xff] }
   0x6   :  { %139 = vmatpush3.msra.mxu0 %v29_v3  ;;  %v16_v16 = vld [vmem:[%s254_s1] sm:$0xff] }
   0x7   :  { %140 = vmatprep.subr.mxu0 %v175_v0  ;;  %v15_v17 = vld [vmem:[%s255_s0] sm:$0xff] }
   0x8   :  { %141 = vmatpush3.msra.mxu0 %v28_v4 }
   0x9   :  { %142 = vmatprep.subr.mxu0 %v175_v0 }
   0xa   :  { %143 = vmatpush3.msra.mxu0 %v27_v5 }
   0xb   :  { %144 = vmatprep.subr.mxu0 %v175_v0 }
   0xc   :  { %145 = vmatpush3.msra.mxu0 %v26_v6 }
   0xd   :  { %146 = vmatprep.subr.mxu0 %v175_v0 }
   0xe   :  { %147 = vmatpush3.msra.mxu0 %v25_v7 }
   0xf   :  { %148 = vmatprep.subr.mxu0 %v175_v0 }
  0x10   :  { %149 = vmatpush3.msra.mxu0 %v24_v8 }
  0x11   :  { %150 = vmatprep.subr.mxu0 %v175_v0 }
  0x12   :  { %151 = vmatpush3.msra.mxu0 %v23_v9 }
  0x13   :  { %152 = vmatprep.subr.mxu0 %v175_v0 }
  0x14   :  { %153 = vmatpush3.msra.mxu0 %v22_v10 }
  0x15   :  { %154 = vmatprep.subr.mxu0 %v175_v0 }
  0x16   :  { %155 = vmatpush3.msra.mxu0 %v21_v11 }
  0x17   :  { %156 = vmatprep.subr.mxu0 %v175_v0 }
  0x18   :  { %157 = vmatpush3.msra.mxu0 %v20_v12 }
  0x19   :  { %158 = vmatprep.subr.mxu0 %v175_v0 }
  0x1a   :  { %159 = vmatpush3.msra.mxu0 %v19_v13 }
  0x1b   :  { %160 = vmatprep.subr.mxu0 %v175_v0 }
  0x1c   :  { %161 = vmatpush3.msra.mxu0 %v18_v14 }
  0x1d   :  { %162 = vmatprep.subr.mxu0 %v175_v0 }
  0x1e   :  { %163 = vmatpush3.msra.mxu0 %v17_v15 }
  0x1f   :  { %164 = vmatprep.subr.mxu0 %v175_v0 }
  0x20   :  { %165 = vmatpush3.msra.mxu0 %v16_v16 }
  0x21   :  { %167 = vmatmul.mubr.f32.vlgmr.msra.gmra.mxu0 %v15_v17 }
  0xe1   :  { %v100_v19 = vpop.f32.mrf.mxu0 }
  0xe2   :  { %v101_v20 = vadd.f32 %v100_v19, %v33_v18 }
  0xe3   :  { %v168_v21 = vpop.f32.mrf.mxu0 }
  0xe4   :  { %v116_v22 = vmul.f32 -1.442695, %v101_v20 }
  0xe6   :  { %171 = vpow2.f32 %v116_v22 }
  0xf3   :  { %v172_v23 = vpop.eup %171 }
  0xf4   :  { %v107_v24 = vadd.f32 1.0, %v172_v23 }
  0xf6   :  { %173 = vrcp.f32 %v107_v24 }
 0x103   :  { %v174_v25 = vpop.eup %173 }
 0x104   :  { %111 = vst.msk [vmem:[%s257_s3] sm:$0xff] %vm110_vm1, %v174_v25 }

</bundles_post_ra>
